<compile_context>
chip_gen: v6e
topology: v6e:2x2x1
jax: 0.10.0
libtpu: 0.0.40
codegen_flags: <defaults>
</compile_context>

<pallas_src>
import math

import jax
import jax.numpy as jnp
from jax.experimental import pallas as pl
from jax.experimental.pallas import tpu as pltpu

# ---- module hyper-parameters (args.*) ---------------------------------------
NHID = 32            # args.nhid
POOL_RATIO = 0.5     # args.pooling_ratio
DROPOUT_RATIO = 0.2  # args.dropout_ratio

# ---- synthetic problem sizes -------------------------------------------------
N_GRAPHS = 4         # number of molecule graphs (rows of modular_feature)
N_NODES = 16         # nodes per molecule graph
N_DDI_EDGES = 8      # ddi_edge_index.shape[1]

K_KEEP = int(math.ceil(POOL_RATIO * N_NODES))   # SAGPooling top-k per graph
FEAT = 2 * NHID                                 # 64 pooled features per graph
OUT_LANES = 128                                 # lane-dense output width


# =============================================================================
# Fused kernel: GCNConv -> SAGPooling -> gmp/gap -> dropout -> edge prediction
# =============================================================================
def _fused_kernel(seed_ref, adj_ref, pp_ref, out_ref):
    # ---- packed parameters + edge ids (one lane-dense (8,128) slab, 1 DMA) ---
    w1    = pp_ref[0:1, 0:NHID]               # (1, nhid)   GCNConv weight row
    b1    = pp_ref[1:2, 0:NHID]               # (1, nhid)   GCNConv bias
    wrel  = pp_ref[2:3, 0:NHID]               # (1, nhid)   GraphConv lin_rel weight
    wroot = pp_ref[3:4, 0:NHID]               # (1, nhid)   GraphConv lin_root weight
    wps   = pp_ref[4:5, 0:FEAT]               # (1, 2*nhid) pred_layer weight (src half)
    brel  = pp_ref[4:5, FEAT:FEAT + 1]        # (1, 1)      GraphConv lin_rel bias
    bpred = pp_ref[4:5, FEAT + 1:FEAT + 2]    # (1, 1)      pred_layer bias
    wpd   = pp_ref[5:6, 0:FEAT]               # (1, 2*nhid) pred_layer weight (dst half)
    src_f = pp_ref[6:7, :]                    # (1, 128)    ddi src graph id (f32, 0-padded)
    dst_f = pp_ref[7:8, :]                    # (1, 128)    ddi dst graph id (f32, 0-padded)

    adj = adj_ref[...]                        # (G, N, N) per-graph adjacency, no self loops

    # ---- GCN normalization: Ahat = D^-1/2 (A+I) D^-1/2 ------------------------
    # adjacency is symmetric, so row/col degrees are equal; both layouts are
    # produced by cheap reductions (no transpose, no float floors / casts).
    deg_c = jnp.sum(adj, axis=2, keepdims=True) + 1.0        # (G, N, 1)
    deg_l = jnp.sum(adj, axis=1, keepdims=True) + 1.0        # (G, 1, N)
    dinv_c = jax.lax.rsqrt(deg_c)
    dinv_l = jax.lax.rsqrt(deg_l)
    # rowsum(Ahat) without materializing Ahat:
    t = jnp.sum(adj * dinv_l, axis=2, keepdims=True)         # (G, N, 1)
    ahat_rowsum = dinv_c * (t + dinv_c)                      # (G, N, 1)

    # ---- conv1 with x = ones(N,1):  Ahat @ (x @ W1) == rowsum(Ahat) * W1 -----
    h = jnp.maximum(ahat_rowsum * w1 + b1, 0.0)              # relu, (G, N, nhid)

    # ---- SAGPooling scorer: GraphConv(nhid, 1) --------------------------------
    # neighbour sum per graph: one batched MXU einsum on the natural layout.
    agg = jnp.einsum("gij,gjd->gid", adj, h,
                     preferred_element_type=jnp.float32)     # (G, N, nhid)
    # score = lin_rel(agg) + lin_root(h): VPU multiply + lane reduce (no MXU).
    score = (jnp.sum(agg * wrel, axis=2, keepdims=True)
             + jnp.sum(h * wroot, axis=2, keepdims=True)
             + brel)                                         # (G, N, 1)

    # ---- per-graph top-k via pairwise rank (VPU compare + XLU reduce) ---------
    ii = jax.lax.broadcasted_iota(jnp.int32, (N_NODES, N_NODES), 0)
    jj = jax.lax.broadcasted_iota(jnp.int32, (N_NODES, N_NODES), 1)
    eye_n = ii == jj
    # score laid out along lanes via diagonal-select + sublane reduce
    # (avoids an explicit (N,1)->(1,N) transpose).
    s_row = jnp.sum(jnp.where(eye_n, score, 0.0), axis=1, keepdims=True)  # (G, 1, N)
    before = jnp.logical_or(
        s_row > score,
        jnp.logical_and(s_row == score, jj < ii))            # index tie-break
    rank = jnp.sum(before.astype(jnp.int32), axis=2, keepdims=True)       # (G, N, 1)
    keep = rank < K_KEEP                                     # (G, N, 1) bool

    # ---- x = x[perm] * tanh(score[perm]); gmp / gap over kept nodes ----------
    xk = h * jnp.tanh(score)                                 # (G, N, nhid)
    gmp = jnp.max(jnp.where(keep, xk, jnp.float32(-1e30)), axis=1)        # (G, nhid)
    gap = (jnp.sum(jnp.where(keep, xk, 0.0), axis=1)
           * jnp.float32(1.0 / K_KEEP))                                   # (G, nhid)
    feat = jnp.concatenate([gmp, gap], axis=1)               # (G, 2*nhid)

    # ---- dropout (fresh nn.Dropout => training mode) --------------------------
    # TODO(synk): RNG stream cannot match torch's; an in-kernel counter hash
    # (lowbias32) on the prefetched seed is used (plain jnp integer ops -> works
    # both under Mosaic and in interpret mode, unlike pltpu.prng_*).
    cnt = (jax.lax.broadcasted_iota(jnp.int32, (N_GRAPHS, FEAT), 0) * FEAT
           + jax.lax.broadcasted_iota(jnp.int32, (N_GRAPHS, FEAT), 1)
           + seed_ref[0])
    x = cnt.astype(jnp.uint32)
    x = (x ^ (x >> 16)) * jnp.uint32(0x7FEB352D)
    x = (x ^ (x >> 15)) * jnp.uint32(0x846CA68B)
    x = x ^ (x >> 16)
    u01 = ((x & jnp.uint32(0x007FFFFF)).astype(jnp.int32).astype(jnp.float32)
           * jnp.float32(1.0 / 8388608.0))                   # uniform [0, 1)
    feat = jnp.where(u01 >= jnp.float32(DROPOUT_RATIO),
                     feat * jnp.float32(1.0 / (1.0 - DROPOUT_RATIO)),
                     jnp.float32(0.0))

    # ---- prediction head, reassociated:
    #   logit[e] = (feat[src_e] . wps) + (feat[dst_e] . wpd) + b
    # per-graph contributions via lane reduce, then an iota-compare "gather"
    # (VPU select + sublane reduce, no MXU, computed at full 128-lane width).
    c_src = jnp.sum(feat * wps, axis=1, keepdims=True)       # (G, 1)
    c_dst = jnp.sum(feat * wpd, axis=1, keepdims=True)       # (G, 1)
    gid = jax.lax.broadcasted_iota(
        jnp.int32, (N_GRAPHS, OUT_LANES), 0).astype(jnp.float32)
    logits = (jnp.sum(jnp.where(gid == src_f, c_src, 0.0), axis=0, keepdims=True)
              + jnp.sum(jnp.where(gid == dst_f, c_dst, 0.0), axis=0, keepdims=True)
              + bpred)                                       # (1, 128) lane-dense
    out_ref[...] = jax.nn.sigmoid(logits)                    # full-lane store


# =============================================================================
# Parameter packing (done ONCE, outside the per-call jit)
# =============================================================================
def pack_params(params):
    pp = jnp.zeros((6, 128), jnp.float32)
    pp = pp.at[0, :NHID].set(params["w1"][0])
    pp = pp.at[1, :NHID].set(params["b1"][0])
    pp = pp.at[2, :NHID].set(params["wrel"][:, 0])
    pp = pp.at[3, :NHID].set(params["wroot"][:, 0])
    pp = pp.at[4, :FEAT].set(params["w_pred_src"][:, 0])
    pp = pp.at[4, FEAT].set(params["brel"][0, 0])
    pp = pp.at[4, FEAT + 1].set(params["b_pred"][0, 0])
    pp = pp.at[5, :FEAT].set(params["w_pred_dst"][:, 0])
    return pp                                                # (6, 128)


# =============================================================================
# Wrapper: minimal per-call packing + single pallas_call
# =============================================================================
@jax.jit
def net_modular_forward(adj, ddi_edge_index, pp_static, dropout_seed):
    G, N, _ = adj.shape
    E = ddi_edge_index.shape[1]

    # Fold the (2, E) ddi edge ids (as f32) into rows 6..7 of the param slab:
    # one concat per call, two input DMAs total (adjacency + slab).
    edges_f = jnp.pad(ddi_edge_index.astype(jnp.float32),
                      ((0, 0), (0, OUT_LANES - E)))          # (2, 128)
    slab = jnp.concatenate([pp_static, edges_f], axis=0)     # (8, 128)

    seed_arr = jnp.reshape(dropout_seed, (1,)).astype(jnp.int32)

    out = pl.pallas_call(
        _fused_kernel,
        out_shape=jax.ShapeDtypeStruct((1, OUT_LANES), jnp.float32),
        grid_spec=pltpu.PrefetchScalarGridSpec(
            num_scalar_prefetch=1,          # dropout seed -> SMEM
            grid=(1,),                      # single step: whole forward fused
            in_specs=[
                pl.BlockSpec((G, N, N), lambda i, s: (0, 0, 0)),   # adjacency (natural layout)
                pl.BlockSpec((8, 128), lambda i, s: (0, 0)),       # params + edge-id slab
            ],
            out_specs=pl.BlockSpec((1, OUT_LANES), lambda i, s: (0, 0)),
        ),
        compiler_params=pltpu.CompilerParams(
            dimension_semantics=("arbitrary",)),
    )(seed_arr, adj, slab)
    return out[0, :E]                                        # .squeeze()


# =============================================================================
if __name__ == "__main__":
    key = jax.random.PRNGKey(0)
    (k_adj, k_src, k_dst, k_w1, k_b1, k_wrel, k_brel, k_wroot,
     k_wpred, k_bpred) = jax.random.split(key, 10)

    # --- synthetic molecule graphs: symmetric adjacency, no self loops --------
    up = jax.random.bernoulli(k_adj, 0.3,
                              (N_GRAPHS, N_NODES, N_NODES)).astype(jnp.float32)
    up = jnp.triu(up, k=1)
    adj = up + jnp.swapaxes(up, 1, 2)                        # (G, N, N)

    # --- ddi edge index over graph ids ----------------------------------------
    src = jax.random.randint(k_src, (N_DDI_EDGES,), 0, N_GRAPHS)
    dst = jax.random.randint(k_dst, (N_DDI_EDGES,), 0, N_GRAPHS)
    ddi_edge_index = jnp.stack([src, dst], axis=0)           # (2, E)

    # --- deterministic parameter init (shapes from __init__) ------------------
    params = {
        # conv1 = GCNConv(1, nhid): weight (1, nhid), bias (nhid,)
        "w1": 0.1 * jax.random.normal(k_w1, (1, NHID), jnp.float32),
        "b1": 0.1 * jax.random.normal(k_b1, (1, NHID), jnp.float32),
        # pool1.gnn = GraphConv(nhid, 1): lin_rel (nhid,1)+bias, lin_root (nhid,1)
        "wrel": 0.1 * jax.random.normal(k_wrel, (NHID, 1), jnp.float32),
        "brel": 0.1 * jax.random.normal(k_brel, (1, 1), jnp.float32),
        "wroot": 0.1 * jax.random.normal(k_wroot, (NHID, 1), jnp.float32),
    }
    # pred_layer = Linear(4*nhid, 1): weight split into src/dst halves
    w_pred = 0.1 * jax.random.normal(k_wpred, (4 * NHID, 1), jnp.float32)
    params["w_pred_src"] = w_pred[:2 * NHID]
    params["w_pred_dst"] = w_pred[2 * NHID:]
    params["b_pred"] = 0.1 * jax.random.normal(k_bpred, (1, 1), jnp.float32)

    pp_static = pack_params(params)                          # packed once, reused per call

    preds = net_modular_forward(adj, ddi_edge_index, pp_static, jnp.int32(0))
    preds = jax.block_until_ready(preds)
    assert preds.shape == (N_DDI_EDGES,)
    assert bool(jnp.all(jnp.isfinite(preds)))
    print("KERNEL_OK")
</pallas_src>

<mosaic_0001>
module attributes {stable_mosaic.version = 11 : i64} {
  func.func @_fused_kernel(%arg0: i32, %arg1: memref<1xi32, #tpu.memory_space<smem>>, %arg2: memref<4x16x16xf32, #tpu.memory_space<vmem>>, %arg3: memref<8x128xf32, #tpu.memory_space<vmem>>, %arg4: memref<1x128xf32, #tpu.memory_space<vmem>>) attributes {dimension_semantics = [#tpu.dimension_semantics<arbitrary>], iteration_bounds = array<i64: 1>, scalar_prefetch = 1 : i64, scratch_operands = 0 : i64, tpu.core_type = #tpu.core_type<tc>, window_params = [{pipeline_mode = #tpu.pipeline_mode<synchronous>, transform_indices = @transform_0, window_bounds = array<i64: 4, 16, 16>}, {pipeline_mode = #tpu.pipeline_mode<synchronous>, transform_indices = @transform_1, window_bounds = array<i64: 8, 128>}, {pipeline_mode = #tpu.pipeline_mode<synchronous>, transform_indices = @transform_2, window_bounds = array<i64: 1, 128>}]} {
    %c0 = arith.constant 0 : index
    %c0_0 = arith.constant 0 : index
    %0 = vector.load %arg3[%c0, %c0_0] : memref<8x128xf32, #tpu.memory_space<vmem>>, vector<1x32xf32>
    %c1 = arith.constant 1 : index
    %c0_1 = arith.constant 0 : index
    %1 = vector.load %arg3[%c1, %c0_1] : memref<8x128xf32, #tpu.memory_space<vmem>>, vector<1x32xf32>
    %c2 = arith.constant 2 : index
    %c0_2 = arith.constant 0 : index
    %2 = vector.load %arg3[%c2, %c0_2] : memref<8x128xf32, #tpu.memory_space<vmem>>, vector<1x32xf32>
    %c3 = arith.constant 3 : index
    %c0_3 = arith.constant 0 : index
    %3 = vector.load %arg3[%c3, %c0_3] : memref<8x128xf32, #tpu.memory_space<vmem>>, vector<1x32xf32>
    %c4 = arith.constant 4 : index
    %c0_4 = arith.constant 0 : index
    %4 = vector.load %arg3[%c4, %c0_4] : memref<8x128xf32, #tpu.memory_space<vmem>>, vector<1x64xf32>
    %c4_5 = arith.constant 4 : index
    %c64 = arith.constant 64 : index
    %5 = vector.load %arg3[%c4_5, %c64] : memref<8x128xf32, #tpu.memory_space<vmem>>, vector<1x1xf32>
    %c4_6 = arith.constant 4 : index
    %c65 = arith.constant 65 : index
    %6 = vector.load %arg3[%c4_6, %c65] : memref<8x128xf32, #tpu.memory_space<vmem>>, vector<1x1xf32>
    %c5 = arith.constant 5 : index
    %c0_7 = arith.constant 0 : index
    %7 = vector.load %arg3[%c5, %c0_7] : memref<8x128xf32, #tpu.memory_space<vmem>>, vector<1x64xf32>
    %c6 = arith.constant 6 : index
    %c0_8 = arith.constant 0 : index
    %8 = vector.load %arg3[%c6, %c0_8] : memref<8x128xf32, #tpu.memory_space<vmem>>, vector<1x128xf32>
    %c7 = arith.constant 7 : index
    %c0_9 = arith.constant 0 : index
    %9 = vector.load %arg3[%c7, %c0_9] : memref<8x128xf32, #tpu.memory_space<vmem>>, vector<1x128xf32>
    %c0_10 = arith.constant 0 : index
    %c0_11 = arith.constant 0 : index
    %c0_12 = arith.constant 0 : index
    %10 = vector.load %arg2[%c0_10, %c0_11, %c0_12] : memref<4x16x16xf32, #tpu.memory_space<vmem>>, vector<4x16x16xf32>
    %cst = arith.constant dense<0.000000e+00> : vector<4x16xf32>
    %11 = vector.multi_reduction <add>, %10, %cst [2] : vector<4x16x16xf32> to vector<4x16xf32>
    %12 = vector.shape_cast %11 : vector<4x16xf32> to vector<4x16x1xf32>
    %cst_13 = arith.constant 1.000000e+00 : f32
    %13 = vector.broadcast %cst_13 : f32 to vector<4x16x1xf32>
    %14 = arith.addf %12, %13 : vector<4x16x1xf32>
    %cst_14 = arith.constant dense<0.000000e+00> : vector<4x16xf32>
    %15 = vector.multi_reduction <add>, %10, %cst_14 [1] : vector<4x16x16xf32> to vector<4x16xf32>
    %16 = vector.shape_cast %15 : vector<4x16xf32> to vector<4x1x16xf32>
    %cst_15 = arith.constant 1.000000e+00 : f32
    %17 = vector.broadcast %cst_15 : f32 to vector<4x1x16xf32>
    %18 = arith.addf %16, %17 : vector<4x1x16xf32>
    %19 = math.rsqrt %14 : vector<4x16x1xf32>
    %20 = math.rsqrt %18 : vector<4x1x16xf32>
    %21 = vector.broadcast %20 : vector<4x1x16xf32> to vector<4x16x16xf32>
    %22 = arith.mulf %10, %21 : vector<4x16x16xf32>
    %cst_16 = arith.constant dense<0.000000e+00> : vector<4x16xf32>
    %23 = vector.multi_reduction <add>, %22, %cst_16 [2] : vector<4x16x16xf32> to vector<4x16xf32>
    %24 = vector.shape_cast %23 : vector<4x16xf32> to vector<4x16x1xf32>
    %25 = arith.addf %24, %19 : vector<4x16x1xf32>
    %26 = arith.mulf %19, %25 : vector<4x16x1xf32>
    %27 = vector.shape_cast %0 : vector<1x32xf32> to vector<1x1x32xf32>
    %28 = vector.broadcast %26 : vector<4x16x1xf32> to vector<4x16x32xf32>
    %29 = vector.broadcast %27 : vector<1x1x32xf32> to vector<4x16x32xf32>
    %30 = arith.mulf %28, %29 : vector<4x16x32xf32>
    %31 = vector.shape_cast %1 : vector<1x32xf32> to vector<1x1x32xf32>
    %32 = vector.broadcast %31 : vector<1x1x32xf32> to vector<4x16x32xf32>
    %33 = arith.addf %30, %32 : vector<4x16x32xf32>
    %cst_17 = arith.constant 0.000000e+00 : f32
    %34 = vector.broadcast %cst_17 : f32 to vector<4x16x32xf32>
    %35 = arith.maximumf %33, %34 : vector<4x16x32xf32>
    "tpu.trace_start"() <{level = 10 : i32, message = "gij,gjd->gid"}> : () -> ()
    %cst_18 = arith.constant dense<0.000000e+00> : vector<4x16x32xf32>
    %36 = tpu.matmul %10, %35, %cst_18 {dimension_numbers = #tpu.dot_dimension_numbers<[2], [1], [1], [2], [0, 0, 0, 1, 1, 2], [0], [0]>} : vector<4x16x16xf32>, vector<4x16x32xf32>, vector<4x16x32xf32> -> vector<4x16x32xf32>
    "tpu.trace_stop"() : () -> ()
    %37 = vector.shape_cast %2 : vector<1x32xf32> to vector<1x1x32xf32>
    %38 = vector.broadcast %37 : vector<1x1x32xf32> to vector<4x16x32xf32>
    %39 = arith.mulf %36, %38 : vector<4x16x32xf32>
    %cst_19 = arith.constant dense<0.000000e+00> : vector<4x16xf32>
    %40 = vector.multi_reduction <add>, %39, %cst_19 [2] : vector<4x16x32xf32> to vector<4x16xf32>
    %41 = vector.shape_cast %40 : vector<4x16xf32> to vector<4x16x1xf32>
    %42 = vector.shape_cast %3 : vector<1x32xf32> to vector<1x1x32xf32>
    %43 = vector.broadcast %42 : vector<1x1x32xf32> to vector<4x16x32xf32>
    %44 = arith.mulf %35, %43 : vector<4x16x32xf32>
    %cst_20 = arith.constant dense<0.000000e+00> : vector<4x16xf32>
    %45 = vector.multi_reduction <add>, %44, %cst_20 [2] : vector<4x16x32xf32> to vector<4x16xf32>
    %46 = vector.shape_cast %45 : vector<4x16xf32> to vector<4x16x1xf32>
    %47 = arith.addf %41, %46 : vector<4x16x1xf32>
    %48 = vector.shape_cast %5 : vector<1x1xf32> to vector<1x1x1xf32>
    %49 = vector.broadcast %48 : vector<1x1x1xf32> to vector<4x16x1xf32>
    %50 = arith.addf %47, %49 : vector<4x16x1xf32>
    %51 = tpu.iota {dimensions = array<i32: 0>} : vector<16x16xi32>
    %52 = tpu.iota {dimensions = array<i32: 1>} : vector<16x16xi32>
    %53 = arith.cmpi eq, %51, %52 : vector<16x16xi32>
    %cst_21 = arith.constant 0.000000e+00 : f32
    %54 = vector.shape_cast %53 : vector<16x16xi1> to vector<1x16x16xi1>
    %55 = vector.broadcast %54 : vector<1x16x16xi1> to vector<4x16x16xi1>
    %56 = vector.shape_cast %50 : vector<4x16x1xf32> to vector<4x16x1xf32>
    %57 = vector.broadcast %56 : vector<4x16x1xf32> to vector<4x16x16xf32>
    %58 = vector.broadcast %cst_21 : f32 to vector<4x16x16xf32>
    %59 = arith.select %55, %57, %58 : vector<4x16x16xi1>, vector<4x16x16xf32>
    %cst_22 = arith.constant dense<0.000000e+00> : vector<4x16xf32>
    %60 = vector.multi_reduction <add>, %59, %cst_22 [1] : vector<4x16x16xf32> to vector<4x16xf32>
    %61 = vector.shape_cast %60 : vector<4x16xf32> to vector<4x1x16xf32>
    %62 = vector.broadcast %61 : vector<4x1x16xf32> to vector<4x16x16xf32>
    %63 = vector.broadcast %50 : vector<4x16x1xf32> to vector<4x16x16xf32>
    %64 = arith.cmpf ogt, %62, %63 : vector<4x16x16xf32>
    %65 = vector.broadcast %61 : vector<4x1x16xf32> to vector<4x16x16xf32>
    %66 = vector.broadcast %50 : vector<4x16x1xf32> to vector<4x16x16xf32>
    %67 = arith.cmpf oeq, %65, %66 : vector<4x16x16xf32>
    %68 = arith.cmpi slt, %52, %51 : vector<16x16xi32>
    %69 = vector.shape_cast %68 : vector<16x16xi1> to vector<1x16x16xi1>
    %70 = vector.broadcast %69 : vector<1x16x16xi1> to vector<4x16x16xi1>
    %71 = arith.andi %67, %70 : vector<4x16x16xi1>
    %72 = arith.ori %64, %71 : vector<4x16x16xi1>
    %73 = arith.extui %72 : vector<4x16x16xi1> to vector<4x16x16xi32>
    %cst_23 = arith.constant dense<0> : vector<4x16xi32>
    %74 = vector.multi_reduction <add>, %73, %cst_23 [2] : vector<4x16x16xi32> to vector<4x16xi32>
    %75 = vector.shape_cast %74 : vector<4x16xi32> to vector<4x16x1xi32>
    %c8_i32 = arith.constant 8 : i32
    %76 = vector.broadcast %c8_i32 : i32 to vector<4x16x1xi32>
    %77 = arith.cmpi slt, %75, %76 : vector<4x16x1xi32>
    %78 = math.tanh %50 : vector<4x16x1xf32>
    %79 = vector.broadcast %78 : vector<4x16x1xf32> to vector<4x16x32xf32>
    %80 = arith.mulf %35, %79 : vector<4x16x32xf32>
    %cst_24 = arith.constant -1.000000e+30 : f32
    %81 = vector.shape_cast %77 : vector<4x16x1xi1> to vector<4x16x1xi1>
    %82 = vector.broadcast %81 : vector<4x16x1xi1> to vector<4x16x32xi1>
    %83 = vector.broadcast %cst_24 : f32 to vector<4x16x32xf32>
    %84 = arith.select %82, %80, %83 : vector<4x16x32xi1>, vector<4x16x32xf32>
    %cst_25 = arith.constant dense<0xFF800000> : vector<4x32xf32>
    %85 = vector.multi_reduction <maximumf>, %84, %cst_25 [1] : vector<4x16x32xf32> to vector<4x32xf32>
    %cst_26 = arith.constant 0.000000e+00 : f32
    %86 = vector.shape_cast %77 : vector<4x16x1xi1> to vector<4x16x1xi1>
    %87 = vector.broadcast %86 : vector<4x16x1xi1> to vector<4x16x32xi1>
    %88 = vector.broadcast %cst_26 : f32 to vector<4x16x32xf32>
    %89 = arith.select %87, %80, %88 : vector<4x16x32xi1>, vector<4x16x32xf32>
    %cst_27 = arith.constant dense<0.000000e+00> : vector<4x32xf32>
    %90 = vector.multi_reduction <add>, %89, %cst_27 [1] : vector<4x16x32xf32> to vector<4x32xf32>
    %cst_28 = arith.constant 1.250000e-01 : f32
    %91 = vector.broadcast %cst_28 : f32 to vector<4x32xf32>
    %92 = arith.mulf %90, %91 : vector<4x32xf32>
    %93 = tpu.concatenate %85, %92 in 1 : vector<4x32xf32>, vector<4x32xf32> -> vector<4x64xf32>
    %94 = tpu.iota {dimensions = array<i32: 0>} : vector<4x64xi32>
    %c64_i32 = arith.constant 64 : i32
    %95 = vector.broadcast %c64_i32 : i32 to vector<4x64xi32>
    %96 = arith.muli %94, %95 : vector<4x64xi32>
    %97 = tpu.iota {dimensions = array<i32: 1>} : vector<4x64xi32>
    %98 = arith.addi %96, %97 : vector<4x64xi32>
    %c0_29 = arith.constant 0 : index
    %99 = memref.load %arg1[%c0_29] : memref<1xi32, #tpu.memory_space<smem>>
    %100 = vector.broadcast %99 : i32 to vector<4x64xi32>
    %101 = arith.addi %98, %100 : vector<4x64xi32>
    %c16_i32 = arith.constant 16 : i32
    %102 = vector.broadcast %c16_i32 : i32 to vector<4x64xi32>
    %103 = arith.shrui %101, %102 : vector<4x64xi32>
    %104 = arith.xori %101, %103 : vector<4x64xi32>
    %c2146121005_i32 = arith.constant 2146121005 : i32
    %105 = vector.broadcast %c2146121005_i32 : i32 to vector<4x64xi32>
    %106 = arith.muli %104, %105 : vector<4x64xi32>
    %c15_i32 = arith.constant 15 : i32
    %107 = vector.broadcast %c15_i32 : i32 to vector<4x64xi32>
    %108 = arith.shrui %106, %107 : vector<4x64xi32>
    %109 = arith.xori %106, %108 : vector<4x64xi32>
    %c-2073254261_i32 = arith.constant -2073254261 : i32
    %110 = vector.broadcast %c-2073254261_i32 : i32 to vector<4x64xi32>
    %111 = arith.muli %109, %110 : vector<4x64xi32>
    %c16_i32_30 = arith.constant 16 : i32
    %112 = vector.broadcast %c16_i32_30 : i32 to vector<4x64xi32>
    %113 = arith.shrui %111, %112 : vector<4x64xi32>
    %114 = arith.xori %111, %113 : vector<4x64xi32>
    %c8388607_i32 = arith.constant 8388607 : i32
    %115 = vector.broadcast %c8388607_i32 : i32 to vector<4x64xi32>
    %116 = arith.andi %114, %115 : vector<4x64xi32>
    %117 = arith.sitofp %116 : vector<4x64xi32> to vector<4x64xf32>
    %cst_31 = arith.constant 1.1920929E-7 : f32
    %118 = vector.broadcast %cst_31 : f32 to vector<4x64xf32>
    %119 = arith.mulf %117, %118 : vector<4x64xf32>
    %cst_32 = arith.constant 2.000000e-01 : f32
    %120 = vector.broadcast %cst_32 : f32 to vector<4x64xf32>
    %121 = arith.cmpf oge, %119, %120 : vector<4x64xf32>
    %cst_33 = arith.constant 1.250000e+00 : f32
    %122 = vector.broadcast %cst_33 : f32 to vector<4x64xf32>
    %123 = arith.mulf %93, %122 : vector<4x64xf32>
    %cst_34 = arith.constant 0.000000e+00 : f32
    %124 = vector.broadcast %cst_34 : f32 to vector<4x64xf32>
    %125 = arith.select %121, %123, %124 : vector<4x64xi1>, vector<4x64xf32>
    %126 = vector.broadcast %4 : vector<1x64xf32> to vector<4x64xf32>
    %127 = arith.mulf %125, %126 : vector<4x64xf32>
    %cst_35 = arith.constant dense<0.000000e+00> : vector<4xf32>
    %128 = vector.multi_reduction <add>, %127, %cst_35 [1] : vector<4x64xf32> to vector<4xf32>
    %129 = vector.shape_cast %128 : vector<4xf32> to vector<4x1xf32>
    %130 = vector.broadcast %7 : vector<1x64xf32> to vector<4x64xf32>
    %131 = arith.mulf %125, %130 : vector<4x64xf32>
    %cst_36 = arith.constant dense<0.000000e+00> : vector<4xf32>
    %132 = vector.multi_reduction <add>, %131, %cst_36 [1] : vector<4x64xf32> to vector<4xf32>
    %133 = vector.shape_cast %132 : vector<4xf32> to vector<4x1xf32>
    %134 = tpu.iota {dimensions = array<i32: 0>} : vector<4x128xi32>
    %135 = arith.sitofp %134 : vector<4x128xi32> to vector<4x128xf32>
    %136 = vector.broadcast %8 : vector<1x128xf32> to vector<4x128xf32>
    %137 = arith.cmpf oeq, %135, %136 : vector<4x128xf32>
    %cst_37 = arith.constant 0.000000e+00 : f32
    %138 = vector.shape_cast %129 : vector<4x1xf32> to vector<4x1xf32>
    %139 = vector.broadcast %138 : vector<4x1xf32> to vector<4x128xf32>
    %140 = vector.broadcast %cst_37 : f32 to vector<4x128xf32>
    %141 = arith.select %137, %139, %140 : vector<4x128xi1>, vector<4x128xf32>
    %cst_38 = arith.constant dense<0.000000e+00> : vector<128xf32>
    %142 = vector.multi_reduction <add>, %141, %cst_38 [0] : vector<4x128xf32> to vector<128xf32>
    %143 = vector.shape_cast %142 : vector<128xf32> to vector<1x128xf32>
    %144 = vector.broadcast %9 : vector<1x128xf32> to vector<4x128xf32>
    %145 = arith.cmpf oeq, %135, %144 : vector<4x128xf32>
    %cst_39 = arith.constant 0.000000e+00 : f32
    %146 = vector.shape_cast %133 : vector<4x1xf32> to vector<4x1xf32>
    %147 = vector.broadcast %146 : vector<4x1xf32> to vector<4x128xf32>
    %148 = vector.broadcast %cst_39 : f32 to vector<4x128xf32>
    %149 = arith.select %145, %147, %148 : vector<4x128xi1>, vector<4x128xf32>
    %cst_40 = arith.constant dense<0.000000e+00> : vector<128xf32>
    %150 = vector.multi_reduction <add>, %149, %cst_40 [0] : vector<4x128xf32> to vector<128xf32>
    %151 = vector.shape_cast %150 : vector<128xf32> to vector<1x128xf32>
    %152 = arith.addf %143, %151 : vector<1x128xf32>
    %153 = vector.broadcast %6 : vector<1x1xf32> to vector<1x128xf32>
    %154 = arith.addf %152, %153 : vector<1x128xf32>
    %155 = arith.negf %154 : vector<1x128xf32>
    %156 = math.exp %155 : vector<1x128xf32>
    %cst_41 = arith.constant 1.000000e+00 : f32
    %157 = vector.broadcast %cst_41 : f32 to vector<1x128xf32>
    %158 = arith.addf %157, %156 : vector<1x128xf32>
    %159 = arith.divf %157, %158 : vector<1x128xf32>
    %c0_42 = arith.constant 0 : index
    %c0_43 = arith.constant 0 : index
    %160 = vector.load %arg4[%c0_42, %c0_43] : memref<1x128xf32, #tpu.memory_space<vmem>>, vector<1x128xf32>
    tpu.vector_store %arg4[%c0_42, %c0_43], %159 {strides = array<i32>} : memref<1x128xf32, #tpu.memory_space<vmem>>, vector<1x128xf32>,
    return
  }
  func.func @transform_0(%arg0: i32, %arg1: memref<1xi32, #tpu.memory_space<smem>>) -> (i32, i32, i32) {
    %c0_i32 = arith.constant 0 : i32
    %c0_i32_0 = arith.constant 0 : i32
    %c0_i32_1 = arith.constant 0 : i32
    %c0_i32_2 = arith.constant 0 : i32
    return %c0_i32, %c0_i32_0, %c0_i32_1 : i32, i32, i32
  }
  func.func @transform_1(%arg0: i32, %arg1: memref<1xi32, #tpu.memory_space<smem>>) -> (i32, i32) {
    %c0_i32 = arith.constant 0 : i32
    %c0_i32_0 = arith.constant 0 : i32
    %c0_i32_1 = arith.constant 0 : i32
    return %c0_i32, %c0_i32_0 : i32, i32
  }
  func.func @transform_2(%arg0: i32, %arg1: memref<1xi32, #tpu.memory_space<smem>>) -> (i32, i32) {
    %c0_i32 = arith.constant 0 : i32
    %c0_i32_0 = arith.constant 0 : i32
    %c0_i32_1 = arith.constant 0 : i32
    return %c0_i32, %c0_i32_0 : i32, i32
  }
}

</mosaic_0001>

<bundles_post_ra>
// kernel: net_modular_forward.1
= control target key start
LH: loop header
LB: loop body
LE: loop exit
PB: predicated region body
PF: predicated region fallthrough
CT: control target
= control target key end

     0   :  { %9 = vsyncpa [#allocation5], 0  ;;  %s1271_s12 = smov [#allocation4]   ;;  %s1650_s0 = inlined_call_operand.<no memory space> [shape: s32[1], index: 0, kind: input, shape index: {}]   ;;  %s1651_s1 = inlined_call_operand.hbm [shape: f32[4,16,16], index: 1, kind: input, shape index: {}]   ;;  %s1652_s2 = inlined_call_operand.vmem [shape: f32[8,128], index: 2, kind: input, shape index: {}]   ;;  %s1653_s3 = inlined_call_operand.vmem [shape: f32[1,128], index: 3, kind: output, shape index: {}]  }
   0x1   :  { %s15_s13 = sshll.u32 %s1271_s12, 4  ;;  %s16_s13 = int_to_ptr.vmem [resolvable:$true] %s15_s13 }
   0x2   :  { %s1257_s14 = scalar_lea.vmem %s16_s13, 1024  ;;  %p1262_p1 = scmp.lt.s32.totalorder %s16_s13, %s16_s13 }
   0x3   :  { %p1258_p0 = scmp.ne.s32.totalorder %s16_s13, %s1257_s14  ;;  %p1263_p2 = scmp.lt.s32.totalorder %s1257_s14, %s1257_s14 }
   0x5   :  { %p1264_p3 = por %p1263_p2, %p1262_p1 }
   0x7   :  { %p1265_p4 = pnand %p1264_p3, %p1258_p0 }
   0x9   :  { %1268 = shalt.err (!%p1265_p4)
}
   0xa   :  { %s1272_s15 = smov 128   ;;  %s1273_s16 = smov 8  }
   0xb   :  { %21 = dma.hbm_to_vmem [thread:$0]  %s1651_s1, 1024, %s16_s13, [#allocation5], %s1272_s15, %s1272_s15, %s1273_s16  }
   0xc   :  { %1269 = dma.done.wait [#allocation5], 1024  }
   0xd   :  { %1270 = vsyncadd [#allocation5], 4294966272  ;;  %vm43_vm0 = vcmask 130048   ;;  %v1301_v0 = vld [vmem:[#allocation4 + $0x8] sm:$0xff]  ;;  %v1303_v1 = vld [vmem:[#allocation4 + $0x18] sm:$0xff]  ;;  %vm536_vm1 = vcmask 261120  }
   0xe   :  { %v1305_v2 = vld [vmem:[#allocation4] sm:$0xff]  ;;  %v47_v3 = vsel %vm43_vm0, %v1301_v0, 0.0  ;;  %v53_v4 = vsel %vm43_vm0, %v1303_v1, 0.0  ;;  %v37_v6 = vld [vmem:[#allocation4 + $0x10] sm:$0xff]  ;;  %v1313_v7 = vld [vmem:[#allocation4 + $0x28] sm:$0xff]  ;;  %s1277_s28 = smov 32  }
   0xf   :  { %v44_v5 = vsel %vm43_vm0, %v1305_v2, 0.0  ;;  %v1315_v8 = vld [vmem:[#allocation4 + $0x38] sm:$0xff]  ;;  %1171 = vmatprep.mubr.msk.f32.mxu0 %vm43_vm0, %v1305_v2  ;;  %48 = vadd.xlane.f32.xlu0 %v47_v3  ;;  %v50_v10 = vsel %vm43_vm0, %v37_v6, 0.0  ;;  %v59_v11 = vsel %vm43_vm0, %v1313_v7, 0.0  ;;  %v1324_v13 = vld [vmem:[#allocation4 + $0x20] sm:$0xff]  ;;  %v1326_v14 = vld [vmem:[#allocation4 + $0x30] sm:$0xff] }
  0x10   :  { %45 = vadd.xlane.f32.xlu1 %v44_v5  ;;  %v76_v9 = vadd.f32 %v47_v3, %v44_v5  ;;  %v65_v12 = vsel %vm43_vm0, %v1315_v8, 0.0  ;;  %v83_v15 = vadd.f32 %v53_v4, %v50_v10  ;;  %v56_v16 = vsel %vm43_vm0, %v1324_v13, 0.0  ;;  %1178 = vmatprep.mubr.msk.f32.mxu1 %vm43_vm0, %v37_v6 }
  0x11   :  { %v62_v17 = vsel %vm43_vm0, %v1326_v14, 0.0  ;;  %v90_v19 = vadd.f32 %v59_v11, %v56_v16 }
  0x12   :  { %v77_v18 = vrot.slane %v76_v9, 4  ;;  %v97_v20 = vadd.f32 %v65_v12, %v62_v17  ;;  %v84_v21 = vrot.slane %v83_v15, 4 }
  0x13   :  { %54 = vadd.xlane.f32.xlu0 %v53_v4  ;;  %v91_v23 = vrot.slane %v90_v19, 4 }
  0x14   :  { %v78_v22 = vadd.f32 %v77_v18, %v76_v9  ;;  %51 = vadd.xlane.f32.xlu1 %v50_v10  ;;  %v98_v24 = vrot.slane %v97_v20, 4  ;;  %v85_v25 = vadd.f32 %v84_v21, %v83_v15 }
  0x15   :  { %v92_v27 = vadd.f32 %v91_v23, %v90_v19 }
  0x16   :  { %v79_v26 = vrot.slane %v78_v22, 2  ;;  %v99_v28 = vadd.f32 %v98_v24, %v97_v20  ;;  %v86_v29 = vrot.slane %v85_v25, 2 }
  0x17   :  { %60 = vadd.xlane.f32.xlu0 %v59_v11  ;;  %v93_v31 = vrot.slane %v92_v27, 2 }
  0x18   :  { %v80_v30 = vadd.f32 %v79_v26, %v78_v22  ;;  %66 = vadd.xlane.f32.xlu1 %v65_v12  ;;  %v100_v32 = vrot.slane %v99_v28, 2  ;;  %v87_v33 = vadd.f32 %v86_v29, %v85_v25 }
  0x19   :  { %v94_v35 = vadd.f32 %v93_v31, %v92_v27 }
  0x1a   :  { %v81_v34 = vrot.slane %v80_v30, 1  ;;  %v101_v36 = vadd.f32 %v100_v32, %v99_v28  ;;  %v88_v37 = vrot.slane %v87_v33, 1  ;;  %v1351_v32 = vld [vmem:[%s1652_s2] ss:$0 sm:$0xff] }
  0x1b   :  { %v95_v39 = vrot.slane %v94_v35, 1  ;;  %57 = vadd.xlane.f32.xlu0 %v56_v16 }
  0x1c   :  { %v82_v38 = vadd.f32 %v81_v34, %v80_v30  ;;  %v102_v40 = vrot.slane %v101_v36, 1  ;;  %63 = vadd.xlane.f32.xlu1 %v62_v17  ;;  %v89_v41 = vadd.f32 %v88_v37, %v87_v33 }
  0x1d   :  { %v96_v43 = vadd.f32 %v95_v39, %v94_v35 }
  0x1e   :  { %v104_v42 = vadd.f32 1.0, %v82_v38  ;;  %v103_v44 = vadd.f32 %v102_v40, %v101_v36  ;;  %v105_v45 = vadd.f32 1.0, %v89_v41  ;;  %v1356_v36 = vld [vmem:[%s1652_s2 + $0x1] ss:$0 sm:$0xff] }
  0x1f   :  { %v106_v46 = vadd.f32 1.0, %v96_v43 }
  0x20   :  { %1205 = vrsqrt.f32 %v104_v42  ;;  %v107_v47 = vadd.f32 1.0, %v103_v44 }
  0x21   :  { %1207 = vrsqrt.f32 %v105_v45 }
  0x22   :  { %1209 = vrsqrt.f32 %v106_v46 }
  0x23   :  { %1211 = vrsqrt.f32 %v107_v47 }
  0x2d   :  { %v1206_v48 = vpop.eup %1205 }
  0x2e   :  { %v1208_v49 = vpop.eup %1207  ;;  %v121_v50 = vmul.f32 %v1206_v48, %v1301_v0  ;;  %v120_v51 = vmul.f32 %v1206_v48, %v1305_v2 }
  0x2f   :  { %v1210_v52 = vpop.eup %1209  ;;  %v123_v53 = vmul.f32 %v1208_v49, %v1303_v1  ;;  %v122_v54 = vmul.f32 %v1208_v49, %v37_v6 }
  0x30   :  { %v1212_v55 = vpop.eup %1211  ;;  %v131_v56 = vsel %vm43_vm0, %v121_v50, 0.0  ;;  %v128_v58 = vsel %vm43_vm0, %v120_v51, 0.0  ;;  %v125_v59 = vmul.f32 %v1210_v52, %v1313_v7  ;;  %v124_v63 = vmul.f32 %v1210_v52, %v1324_v13  ;;  %v1365_v51 = vld [vmem:[%s1652_s2 + $0x3] ss:$0 sm:$0xff] }
  0x31   :  { %132 = vadd.xlane.f32.xlu0 %v131_v56  ;;  %v137_v57 = vsel %vm43_vm0, %v123_v53, 0.0  ;;  %v134_v60 = vsel %vm43_vm0, %v122_v54, 0.0  ;;  %v127_v61 = vmul.f32 %v1212_v55, %v1315_v8  ;;  %v126_v3 = vmul.f32 %v1212_v55, %v1326_v14 }
  0x32   :  { %138 = vadd.xlane.f32.xlu1 %v137_v57  ;;  %v143_v62 = vsel %vm43_vm0, %v125_v59, 0.0  ;;  %v140_v4 = vsel %vm43_vm0, %v124_v63, 0.0 }
  0x33   :  { %v149_v2 = vsel %vm43_vm0, %v127_v61, 0.0  ;;  %v146_v5 = vsel %vm43_vm0, %v126_v3, 0.0 }
  0x35   :  { %129 = vadd.xlane.f32.xlu0 %v128_v58 }
  0x36   :  { %135 = vadd.xlane.f32.xlu1 %v134_v60 }
  0x39   :  { %144 = vadd.xlane.f32.xlu0 %v143_v62 }
  0x3a   :  { %150 = vadd.xlane.f32.xlu1 %v149_v2 }
  0x3d   :  { %141 = vadd.xlane.f32.xlu0 %v140_v4 }
  0x3e   :  { %147 = vadd.xlane.f32.xlu1 %v146_v5 }
  0x98   :  { %v49_v6 = vpop.xlane.xlu0 %48 }
  0x99   :  { %v46_v9 = vpop.xlane.xlu1 %45  ;;  %v69_v12 = vadd.f32 1.0, %v49_v6 }
  0x9a   :  { %v68_v17 = vadd.f32 1.0, %v46_v9 }
  0x9b   :  { %1213 = vrsqrt.f32 %v69_v12 }
  0x9c   :  { %v55_v10 = vpop.xlane.xlu0 %54 }
  0x9d   :  { %v52_v11 = vpop.xlane.xlu1 %51  ;;  %v71_v15 = vadd.f32 1.0, %v55_v10 }
  0x9e   :  { %v70_v19 = vadd.f32 1.0, %v52_v11 }
  0x9f   :  { %1215 = vrsqrt.f32 %v71_v15 }
  0xa0   :  { %v61_v16 = vpop.xlane.xlu0 %60  ;;  %1217 = vrsqrt.f32 %v68_v17 }
  0xa1   :  { %v67_v18 = vpop.xlane.xlu1 %66  ;;  %v73_v20 = vadd.f32 1.0, %v61_v16  ;;  %1219 = vrsqrt.f32 %v70_v19 }
  0xa2   :  { %v75_v21 = vadd.f32 1.0, %v67_v18 }
  0xa3   :  { %1221 = vrsqrt.f32 %v73_v20 }
  0xa4   :  { %v58_v22 = vpop.xlane.xlu0 %57  ;;  %1223 = vrsqrt.f32 %v75_v21 }
  0xa5   :  { %v64_v23 = vpop.xlane.xlu1 %63  ;;  %v72_v24 = vadd.f32 1.0, %v58_v22 }
  0xa6   :  { %v74_v25 = vadd.f32 1.0, %v64_v23 }
  0xa7   :  { %1225 = vrsqrt.f32 %v72_v24 }
  0xa8   :  { %v1214_v26 = vpop.eup %1213  ;;  %1227 = vrsqrt.f32 %v74_v25 }
  0xac   :  { %v1216_v27 = vpop.eup %1215 }
  0xad   :  { %v1218_v31 = vpop.eup %1217 }
  0xae   :  { %v1220_v34 = vpop.eup %1219 }
  0xb0   :  { %v1222_v42 = vpop.eup %1221 }
  0xb1   :  { %v1224_v45 = vpop.eup %1223 }
  0xb4   :  { %v1226_v56 = vpop.eup %1225 }
  0xb5   :  { %v1228_v60 = vpop.eup %1227 }
  0xba   :  { %v133_v28 = vpop.xlane.xlu0 %132 }
  0xbb   :  { %v153_v29 = vadd.f32 %v1214_v26, %v133_v28  ;;  %v139_v30 = vpop.xlane.xlu1 %138 }
  0xbc   :  { %v155_v33 = vadd.f32 %v1216_v27, %v139_v30 }
  0xbd   :  { %v161_v35 = vmul.f32 %v1214_v26, %v153_v29 }
  0xbe   :  { %v163_v37 = vmul.f32 %v1216_v27, %v155_v33  ;;  %v130_v38 = vpop.xlane.xlu0 %129 }
  0xbf   :  { %v173_v39 = vmul.f32 %v1351_v32, %v161_v35  ;;  %v152_v40 = vadd.f32 %v1218_v31, %v130_v38  ;;  %v136_v41 = vpop.xlane.xlu1 %135 }
  0xc0   :  { %v175_v43 = vmul.f32 %v1351_v32, %v163_v37  ;;  %v154_v44 = vadd.f32 %v1220_v34, %v136_v41 }
  0xc1   :  { %v185_v46 = vadd.f32 %v1356_v36, %v173_v39  ;;  %v160_v47 = vmul.f32 %v1218_v31, %v152_v40 }
  0xc2   :  { %v187_v48 = vadd.f32 %v1356_v36, %v175_v43  ;;  %v162_v49 = vmul.f32 %v1220_v34, %v154_v44  ;;  %v145_v50 = vpop.xlane.xlu0 %144 }
  0xc3   :  { %v1367_v52 = vmax.f32 %v185_v46, 0.0  ;;  %v172_v53 = vmul.f32 %v1351_v32, %v160_v47  ;;  %v157_v54 = vadd.f32 %v1222_v42, %v145_v50  ;;  %v151_v55 = vpop.xlane.xlu1 %150 }
  0xc4   :  { %v1370_v57 = vmax.f32 %v187_v48, 0.0  ;;  %v174_v58 = vmul.f32 %v1351_v32, %v162_v49  ;;  %v159_v59 = vadd.f32 %v1224_v45, %v151_v55 }
  0xc5   :  { %v184_v61 = vadd.f32 %v1356_v36, %v172_v53  ;;  %v165_v62 = vmul.f32 %v1222_v42, %v157_v54  ;;  %1167 = vmatprep.subr.mxu0 %v1367_v52  ;;  %v566_v63 = vmul.f32 %v1365_v51, %v1367_v52 }
  0xc6   :  { %v186_v2 = vadd.f32 %v1356_v36, %v174_v58  ;;  %v167_v3 = vmul.f32 %v1224_v45, %v159_v59  ;;  %v142_v4 = vpop.xlane.xlu0 %141  ;;  %1168 = vmatpush3.msra.mxu0 %v1367_v52  ;;  %1174 = vmatprep.subr.mxu1 %v1370_v57  ;;  %v568_v5 = vmul.f32 %v1365_v51, %v1370_v57 }
  0xc7   :  { %v1382_v6 = vmax.f32 %v184_v61, 0.0  ;;  %v177_v9 = vmul.f32 %v1351_v32, %v165_v62  ;;  %v156_v10 = vadd.f32 %v1226_v56, %v142_v4  ;;  %v148_v11 = vpop.xlane.xlu1 %147  ;;  %1175 = vmatpush3.msra.mxu1 %v1370_v57  ;;  %v576_v12 = vsel %vm536_vm1, %v566_v63, 0.0 }
  0xc8   :  { %v1387_v15 = vmax.f32 %v186_v2, 0.0  ;;  %v179_v16 = vmul.f32 %v1351_v32, %v167_v3  ;;  %v158_v17 = vadd.f32 %v1228_v60, %v148_v11  ;;  %577 = vadd.xlane.f32.xlu1 %v576_v12  ;;  %v582_v23 = vsel %vm536_vm1, %v568_v5, 0.0 }
  0xc9   :  { %v189_v18 = vadd.f32 %v1356_v36, %v177_v9  ;;  %v164_v19 = vmul.f32 %v1226_v56, %v156_v10  ;;  %1169 = vmatprep.subr.mxu0 %v1382_v6  ;;  %v565_v20 = vmul.f32 %v1365_v51, %v1382_v6  ;;  %v1274_v63 = vmov 64  }
  0xca   :  { %v191_v21 = vadd.f32 %v1356_v36, %v179_v16  ;;  %v166_v22 = vmul.f32 %v1228_v60, %v158_v17  ;;  %1170 = vmatpush3.msra.mxu0 %v1382_v6  ;;  %1176 = vmatprep.subr.mxu1 %v1387_v15  ;;  %v567_v27 = vmul.f32 %v1365_v51, %v1387_v15  ;;  %v605_v9 = vlaneseq  ;;  %v1464_v17 = vld [vmem:[%s1652_s2 + $0x4] sm:$0x1] }
  0xcb   :  { %v1398_v24 = vmax.f32 %v189_v18, 0.0  ;;  %v176_v25 = vmul.f32 %v1351_v32, %v164_v19  ;;  %1172 = vmatmul.mubr.msk.f32.vlgmr.msra.gmra.mxu0 %vm43_vm0, %v1301_v0  ;;  %1177 = vmatpush3.msra.mxu1 %v1387_v15  ;;  %v573_v26 = vsel %vm536_vm1, %v565_v20, 0.0 }
  0xcc   :  { %v1407_v28 = vmax.f32 %v191_v21, 0.0  ;;  %v178_v29 = vmul.f32 %v1351_v32, %v166_v22  ;;  %583 = vadd.xlane.f32.xlu1 %v582_v23  ;;  %574 = vadd.xlane.f32.xlu0 %v573_v26  ;;  %v579_v34 = vsel %vm536_vm1, %v567_v27, 0.0  ;;  %v1458_v11 = vshrl.u32 %v605_v9, 7 }
  0xcd   :  { %v188_v30 = vadd.f32 %v1356_v36, %v176_v25  ;;  %1179 = vmatmul.mubr.msk.f32.vlgmr.msra.gmra.mxu1 %vm43_vm0, %v1303_v1  ;;  %1181 = vmatprep.subr.mxu0 %v1398_v24  ;;  %v570_v0 = vmul.f32 %v1365_v51, %v1398_v24 }
  0xce   :  { %v190_v31 = vadd.f32 %v1356_v36, %v178_v29  ;;  %1182 = vmatpush3.msra.mxu0 %v1398_v24  ;;  %1188 = vmatprep.subr.mxu1 %v1407_v28  ;;  %v1145_v36 = vld [vmem:[%s1652_s2 + $0x2] ss:$0 sm:$0xff]  ;;  %v572_v61 = vmul.f32 %v1365_v51, %v1407_v28  ;;  %v607_v16 = vsub.s32 0, %v1458_v11 }
  0xcf   :  { %v1419_v33 = vmax.f32 %v188_v30, 0.0  ;;  %1189 = vmatpush3.msra.mxu1 %v1407_v28  ;;  %v588_v32 = vsel %vm536_vm1, %v570_v0, 0.0  ;;  %1185 = vmatprep.mubr.msk.f32.mxu0 %vm43_vm0, %v1324_v13 }
  0xd0   :  { %v1426_v1 = vmax.f32 %v190_v31, 0.0  ;;  %589 = vadd.xlane.f32.xlu1 %v588_v32  ;;  %580 = vadd.xlane.f32.xlu0 %v579_v34  ;;  %v594_v2 = vsel %vm536_vm1, %v572_v61, 0.0  ;;  %v1467_v19 = vrot.slane %v1464_v17, %v607_v16 }
  0xd1   :  { %1183 = vmatprep.subr.mxu0 %v1419_v33  ;;  %v569_v35 = vmul.f32 %v1365_v51, %v1419_v33  ;;  %1192 = vmatprep.mubr.msk.f32.mxu1 %vm43_vm0, %v1326_v14 }
  0xd2   :  { %1184 = vmatpush3.msra.mxu0 %v1419_v33  ;;  %1190 = vmatprep.subr.mxu1 %v1426_v1  ;;  %v571_v62 = vmul.f32 %v1365_v51, %v1426_v1 }
  0xd3   :  { %1186 = vmatmul.mubr.msk.f32.vlgmr.msra.gmra.mxu0 %vm43_vm0, %v1313_v7  ;;  %1191 = vmatpush3.msra.mxu1 %v1426_v1  ;;  %v585_v13 = vsel %vm536_vm1, %v569_v35, 0.0 }
  0xd4   :  { %586 = vadd.xlane.f32.xlu0 %v585_v13  ;;  %1193 = vmatmul.mubr.msk.f32.vlgmr.msra.gmra.mxu1 %vm43_vm0, %v1315_v8  ;;  %v591_v3 = vsel %vm536_vm1, %v571_v62, 0.0 }
  0xd5   :  { %1203 = vset.pattern.permute.xlu1 %v1274_v63  ;;  %1202 = vset.pattern.permute.xlu0 %v1274_v63 }
 0x151   :  { %v578_v4 = vpop.xlane.xlu1 %577 }
 0x155   :  { %v575_v5 = vpop.xlane.xlu0 %574  ;;  %v584_v10 = vpop.xlane.xlu1 %583 }
 0x159   :  { %v581_v12 = vpop.xlane.xlu0 %580  ;;  %v590_v51 = vpop.xlane.xlu1 %589 }
 0x15d   :  { %v587_v18 = vpop.xlane.xlu0 %586 }
 0x18b   :  { %v1173_v14 = vpop.f32.mrf.mxu0 }
 0x18c   :  { %v529_v37 = vmul.f32 %v1173_v14, %v1145_v36 }
 0x18d   :  { %v272_v38 = vpop.f32.mrf.mxu0  ;;  %v1180_v39 = vpop.f32.mrf.mxu1 }
 0x18e   :  { %v528_v40 = vmul.f32 %v1145_v36, %v272_v38  ;;  %v531_v41 = vmul.f32 %v1180_v39, %v1145_v36  ;;  %v540_v7 = vsel %vm536_vm1, %v529_v37, 0.0 }
 0x18f   :  { %v353_v42 = vpop.f32.mrf.mxu1  ;;  %541 = vadd.xlane.f32.xlu1 %v540_v7 }
 0x190   :  { %v530_v43 = vmul.f32 %v1145_v36, %v353_v42  ;;  %v537_v44 = vsel %vm536_vm1, %v528_v40, 0.0  ;;  %v546_v45 = vsel %vm536_vm1, %v531_v41, 0.0 }
 0x191   :  { %538 = vadd.xlane.f32.xlu0 %v537_v44 }
 0x192   :  { %v543_v47 = vsel %vm536_vm1, %v530_v43, 0.0 }
 0x193   :  { %547 = vadd.xlane.f32.xlu1 %v546_v45  ;;  %v1187_v8 = vpop.f32.mrf.mxu0 }
 0x194   :  { %v533_v46 = vmul.f32 %v1187_v8, %v1145_v36  ;;  %v1194_v48 = vpop.f32.mrf.mxu1 }
 0x195   :  { %544 = vadd.xlane.f32.xlu0 %v543_v47  ;;  %v434_v49 = vpop.f32.mrf.mxu0  ;;  %v535_v50 = vmul.f32 %v1194_v48, %v1145_v36 }
 0x196   :  { %v532_v53 = vmul.f32 %v1145_v36, %v434_v49  ;;  %v552_v54 = vsel %vm536_vm1, %v533_v46, 0.0  ;;  %v515_v55 = vpop.f32.mrf.mxu1 }
 0x197   :  { %553 = vadd.xlane.f32.xlu1 %v552_v54  ;;  %v534_v56 = vmul.f32 %v1145_v36, %v515_v55  ;;  %v558_v59 = vsel %vm536_vm1, %v535_v50, 0.0  ;;  %v1484_v50 = vadd.s32 8, %v1458_v11 }
 0x198   :  { %v549_v58 = vsel %vm536_vm1, %v532_v53, 0.0  ;;  %v1486_v53 = vand.u32 127, %v605_v9 }
 0x199   :  { %550 = vadd.xlane.f32.xlu0 %v549_v58  ;;  %v555_v60 = vsel %vm536_vm1, %v534_v56, 0.0 }
 0x19a   :  { %vm623_vm2 = vcmp.eq.s32.totalorder %v1484_v50, %v1486_v53  ;;  %vm622_vm3 = vcmp.eq.s32.totalorder %v1458_v11, %v1486_v53  ;;  %vm728_vm4 = vcmp.lt.s32.totalorder %v1486_v53, %v1458_v11  ;;  %vm729_vm5 = vcmp.lt.s32.totalorder %v1486_v53, %v1484_v50 }
 0x19b   :  { %559 = vadd.xlane.f32.xlu1 %v558_v59 }
 0x19d   :  { %556 = vadd.xlane.f32.xlu0 %v555_v60 }
 0x19f   :  { %595 = vadd.xlane.f32.xlu1 %v594_v2 }
 0x1a1   :  { %592 = vadd.xlane.f32.xlu0 %v591_v3 }
 0x218   :  { %v542_v20 = vpop.xlane.xlu1 %541 }
 0x219   :  { %v598_v21 = vadd.f32 %v578_v4, %v542_v20 }
 0x21a   :  { %v539_v22 = vpop.xlane.xlu0 %538 }
 0x21b   :  { %v610_v23 = vadd.f32 %v1467_v19, %v598_v21  ;;  %v597_v25 = vadd.f32 %v575_v5, %v539_v22 }
 0x21c   :  { %v548_v26 = vpop.xlane.xlu1 %547 }
 0x21d   :  { %v609_v27 = vadd.f32 %v1467_v19, %v597_v25  ;;  %v600_v29 = vadd.f32 %v584_v10, %v548_v26  ;;  %635 = vperm.xlu1 %1203, %v610_v23  }
 0x21e   :  { %v545_v30 = vpop.xlane.xlu0 %544 }
 0x21f   :  { %v612_v0 = vadd.f32 %v1467_v19, %v600_v29  ;;  %v599_v31 = vadd.f32 %v581_v12, %v545_v30  ;;  %630 = vperm.xlu0 %1202, %v609_v27  }
 0x220   :  { %v554_v32 = vpop.xlane.xlu1 %553 }
 0x221   :  { %1229 = vtanh.f32 %v612_v0  ;;  %v602_v34 = vadd.f32 %v590_v51, %v554_v32  ;;  %645 = vperm.xlu1 %1203, %v612_v0   ;;  %v611_v13 = vadd.f32 %v1467_v19, %v599_v31 }
 0x222   :  { %v551_v35 = vpop.xlane.xlu0 %550  ;;  %1231 = vtanh.f32 %v609_v27 }
 0x223   :  { %v614_v36 = vadd.f32 %v1467_v19, %v602_v34  ;;  %v601_v38 = vadd.f32 %v587_v18, %v551_v35 }
 0x224   :  { %v560_v14 = vpop.xlane.xlu1 %559 }
 0x225   :  { %640 = vperm.xlu1 %1203, %v611_v13   ;;  %1233 = vtanh.f32 %v614_v36  ;;  %v613_v40 = vadd.f32 %v1467_v19, %v601_v38 }
 0x226   :  { %v557_v37 = vpop.xlane.xlu0 %556  ;;  %1235 = vtanh.f32 %v610_v23 }
 0x227   :  { %1237 = vtanh.f32 %v611_v13 }
 0x228   :  { %v596_v7 = vpop.xlane.xlu1 %595  ;;  %1239 = vtanh.f32 %v613_v40 }
 0x229   :  { %655 = vperm.xlu1 %1203, %v614_v36   ;;  %v604_v43 = vadd.f32 %v596_v7, %v560_v14  ;;  %v1275_v36 = vmov 0  }
 0x22a   :  { %v593_v39 = vpop.xlane.xlu0 %592 }
 0x22b   :  { %v603_v41 = vadd.f32 %v593_v39, %v557_v37  ;;  %v1480_v8 = vadd.f32 %v1467_v19, %v604_v43 }
 0x22d   :  { %650 = vperm.xlu1 %1203, %v613_v40   ;;  %v1476_v44 = vadd.f32 %v1467_v19, %v603_v41 }
 0x22e   :  { %v1230_v42 = vpop.eup %1229 }
 0x22f   :  { %895 = vperm.xlu0 %1202, %v1230_v42   ;;  %v1232_v45 = vpop.eup %1231  ;;  %1241 = vtanh.f32 %v1476_v44 }
 0x230   :  { %1243 = vtanh.f32 %v1480_v8 }
 0x231   :  { %660 = vperm.xlu1 %1203, %v1476_v44  }
 0x232   :  { %v1234_v46 = vpop.eup %1233 }
 0x233   :  { %880 = vperm.xlu0 %1202, %v1232_v45   ;;  %v1236_v47 = vpop.eup %1235 }
 0x234   :  { %v1238_v48 = vpop.eup %1237 }
 0x235   :  { %665 = vperm.xlu1 %1203, %v1480_v8   ;;  %v1240_v49 = vpop.eup %1239 }
 0x237   :  { %905 = vperm.xlu0 %1202, %v1234_v46  }
 0x239   :  { %885 = vperm.xlu1 %1203, %v1236_v47  }
 0x23d   :  { %890 = vperm.xlu1 %1203, %v1238_v48  }
 0x241   :  { %900 = vperm.xlu1 %1203, %v1240_v49  }
 0x298   :  { %v636_v54 = vpop.permute.xlu1 %635 }
 0x299   :  { %v669_v55 = vsel %vm623_vm2, %v636_v54, 0.0 }
 0x29a   :  { %v631_v56 = vpop.permute.xlu0 %630  ;;  %v677_v59 = vsel %vm43_vm0, %v669_v55, 0.0 }
 0x29b   :  { %v668_v58 = vsel %vm622_vm3, %v631_v56, 0.0 }
 0x29c   :  { %v676_v60 = vsel %vm43_vm0, %v668_v58, 0.0  ;;  %v1500_v61 = vpop.permute.xlu1 %645 }
 0x29d   :  { %v678_v62 = vadd.f32 %v677_v59, %v676_v60  ;;  %v671_v2 = vsel %vm623_vm2, %v1500_v61, 0.0 }
 0x29e   :  { %v686_v9 = vsel %vm43_vm0, %v671_v2, 0.0 }
 0x29f   :  { %v679_v63 = vrot.slane %v678_v62, 4 }
 0x2a0   :  { %v641_v3 = vpop.permute.xlu1 %640 }
 0x2a1   :  { %v680_v4 = vadd.f32 %v679_v63, %v678_v62  ;;  %v670_v5 = vsel %vm622_vm3, %v641_v3, 0.0 }
 0x2a2   :  { %v685_v10 = vsel %vm43_vm0, %v670_v5, 0.0 }
 0x2a3   :  { %v681_v12 = vrot.slane %v680_v4, 2  ;;  %v687_v16 = vadd.f32 %v686_v9, %v685_v10 }
 0x2a4   :  { %v1511_v51 = vpop.permute.xlu1 %655 }
 0x2a5   :  { %v682_v18 = vadd.f32 %v681_v12, %v680_v4  ;;  %v688_v20 = vrot.slane %v687_v16, 4  ;;  %v673_v23 = vsel %vm623_vm2, %v1511_v51, 0.0 }
 0x2a6   :  { %v695_v30 = vsel %vm43_vm0, %v673_v23, 0.0 }
 0x2a7   :  { %v683_v21 = vrot.slane %v682_v18, 1  ;;  %v689_v22 = vadd.f32 %v688_v20, %v687_v16 }
 0x2a8   :  { %v1517_v25 = vpop.permute.xlu1 %650 }
 0x2a9   :  { %v684_v26 = vadd.f32 %v683_v21, %v682_v18  ;;  %v690_v27 = vrot.slane %v689_v22, 2  ;;  %v672_v29 = vsel %vm622_vm3, %v1517_v25, 0.0 }
 0x2aa   :  { %v694_v0 = vsel %vm43_vm0, %v672_v29, 0.0 }
 0x2ab   :  { %vm712_vm6 = vcmp.gt.f32.partialorder %v684_v26, %v631_v56  ;;  %vm720_vm7 = vcmp.eq.f32.partialorder %v684_v26, %v631_v56  ;;  %v691_v31 = vadd.f32 %v690_v27, %v689_v22  ;;  %v696_v32 = vadd.f32 %v695_v30, %v694_v0 }
 0x2ac   :  { %vm734_vm8 = vmand %vm720_vm7, %vm728_vm4  ;;  %v1532_v34 = vpop.permute.xlu1 %660  ;;  %vm713_vm9 = vcmp.gt.f32.partialorder %v684_v26, %v636_v54  ;;  %vm721_vm10 = vcmp.eq.f32.partialorder %v684_v26, %v636_v54 }
 0x2ad   :  { %vm742_vm11 = vmor %vm712_vm6, %vm734_vm8  ;;  %v692_v35 = vrot.slane %v691_v31, 1  ;;  %v697_v13 = vrot.slane %v696_v32, 4  ;;  %v674_v39 = vsel %vm622_vm3, %v1532_v34, 0.0 }
 0x2ae   :  { %vm735_vm12 = vmand %vm721_vm10, %vm729_vm5  ;;  %v750_v14 = vsel %vm742_vm11, 1, %v1275_v36  ;;  %v703_v46 = vsel %vm43_vm0, %v674_v39, 0.0 }
 0x2af   :  { %v693_v37 = vadd.f32 %v692_v35, %v691_v31  ;;  %v698_v38 = vadd.f32 %v697_v13, %v696_v32  ;;  %vm743_vm13 = vmor %vm713_vm9, %vm735_vm12  ;;  %v758_v40 = vsel %vm43_vm0, %v750_v14, 0 }
 0x2b0   :  { %v1543_v41 = vpop.permute.xlu1 %665  ;;  %v751_v7 = vsel %vm743_vm13, 1, %v1275_v36  ;;  %v760_v42 = vshrl.u32 %v758_v40, 16  ;;  %v759_v16 = vand.u32 65535, %v758_v40 }
 0x2b1   :  { %vm714_vm14 = vcmp.gt.f32.partialorder %v693_v37, %v641_v3  ;;  %vm722_vm15 = vcmp.eq.f32.partialorder %v693_v37, %v641_v3  ;;  %v699_v43 = vrot.slane %v698_v38, 2  ;;  %v675_v45 = vsel %vm623_vm2, %v1543_v41, 0.0 }
 0x2b2   :  { %vm736_vm3 = vmand %vm722_vm15, %vm728_vm4  ;;  %v704_v47 = vsel %vm43_vm0, %v675_v45, 0.0  ;;  %v771_v48 = vsel %vm43_vm0, %v751_v7, 0  ;;  %v762_v49 = vcvt.s32.f32 %v760_v42  ;;  %vm715_vm7 = vcmp.gt.f32.partialorder %v693_v37, %v1500_v61 }
 0x2b3   :  { %vm744_vm6 = vmor %vm714_vm14, %vm736_vm3  ;;  %v700_v54 = vadd.f32 %v699_v43, %v698_v38  ;;  %v705_v55 = vadd.f32 %v704_v47, %v703_v46  ;;  %v773_v56 = vshrl.u32 %v771_v48, 16  ;;  %vm723_vm2 = vcmp.eq.f32.partialorder %v693_v37, %v1500_v61 }
 0x2b4   :  { %765 = vadd.xlane.f32.xlu1 %v762_v49  ;;  %v752_v58 = vsel %vm744_vm6, 1, %v1275_v36  ;;  %vm737_vm8 = vmand %vm723_vm2, %vm729_vm5  ;;  %v772_v21 = vand.u32 65535, %v771_v48 }
 0x2b5   :  { %v701_v59 = vrot.slane %v700_v54, 1  ;;  %v706_v60 = vrot.slane %v705_v55, 4  ;;  %v775_v62 = vcvt.s32.f32 %v773_v56  ;;  %v784_v63 = vsel %vm43_vm0, %v752_v58, 0  ;;  %vm745_vm9 = vmor %vm715_vm7, %vm737_vm8  ;;  %v1242_v56 = vpop.eup %1241 }
 0x2b6   :  { %v786_v4 = vshrl.u32 %v784_v63, 16  ;;  %v753_v5 = vsel %vm745_vm9, 1, %v1275_v36  ;;  %v785_v26 = vand.u32 65535, %v784_v63  ;;  %v1244_v58 = vpop.eup %1243 }
 0x2b7   :  { %v702_v2 = vadd.f32 %v701_v59, %v700_v54  ;;  %v707_v3 = vadd.f32 %v706_v60, %v705_v55  ;;  %778 = vadd.xlane.f32.xlu0 %v775_v62  ;;  %v797_v9 = vsel %vm43_vm0, %v753_v5, 0  ;;  %v896_v59 = vpop.permute.xlu0 %895  ;;  %v886_v60 = vpop.permute.xlu1 %885 }
 0x2b8   :  { %v788_v10 = vcvt.s32.f32 %v786_v4  ;;  %v799_v12 = vshrl.u32 %v797_v9, 16  ;;  %v798_v0 = vand.u32 65535, %v797_v9  ;;  %v787_v32 = vcvt.s32.f32 %v785_v26 }
 0x2b9   :  { %vm716_vm10 = vcmp.gt.f32.partialorder %v702_v2, %v1517_v25  ;;  %vm724_vm11 = vcmp.eq.f32.partialorder %v702_v2, %v1517_v25  ;;  %v708_v61 = vrot.slane %v707_v3, 2  ;;  %vm717_vm14 = vcmp.gt.f32.partialorder %v702_v2, %v1511_v51 }
 0x2ba   :  { %vm738_vm12 = vmand %vm724_vm11, %vm728_vm4  ;;  %vm725_vm15 = vcmp.eq.f32.partialorder %v702_v2, %v1511_v51  ;;  %v801_v20 = vcvt.s32.f32 %v799_v12  ;;  %v761_v25 = vcvt.s32.f32 %v759_v16  ;;  %v774_v51 = vcvt.s32.f32 %v772_v21 }
 0x2bb   :  { %vm746_vm13 = vmor %vm716_vm10, %vm738_vm12  ;;  %v709_v18 = vadd.f32 %v708_v61, %v707_v3  ;;  %791 = vadd.xlane.f32.xlu0 %v788_v10  ;;  %v800_v13 = vcvt.s32.f32 %v798_v0  ;;  %v881_v62 = vpop.permute.xlu0 %880  ;;  %v891_v63 = vpop.permute.xlu1 %890 }
 0x2bc   :  { %vm739_vm3 = vmand %vm725_vm15, %vm729_vm5  ;;  %v754_v22 = vsel %vm746_vm13, 1, %v1275_v36  ;;  %804 = vadd.xlane.f32.xlu1 %v801_v20  ;;  %v918_v26 = vmul.f32 %v881_v62, %v1382_v6  ;;  %vm1038_vm15 = vcmask 1041409  }
 0x2bd   :  { %v710_v23 = vrot.slane %v709_v18, 1  ;;  %vm747_vm6 = vmor %vm717_vm14, %vm739_vm3  ;;  %v810_v30 = vsel %vm43_vm0, %v754_v22, 0 }
 0x2be   :  { %v755_v27 = vsel %vm747_vm6, 1, %v1275_v36  ;;  %v812_v35 = vshrl.u32 %v810_v30, 16  ;;  %v811_v45 = vand.u32 65535, %v810_v30 }
 0x2bf   :  { %v711_v29 = vadd.f32 %v710_v23, %v709_v18  ;;  %763 = vadd.xlane.f32.xlu0 %v761_v25  ;;  %v823_v31 = vsel %vm43_vm0, %v755_v27, 0  ;;  %v1595_v2 = vpop.permute.xlu0 %905  ;;  %v1597_v3 = vpop.permute.xlu1 %900 }
 0x2c0   :  { %776 = vadd.xlane.f32.xlu1 %v774_v51  ;;  %v825_v14 = vshrl.u32 %v823_v31, 16  ;;  %v814_v50 = vcvt.s32.f32 %v812_v35  ;;  %v824_v46 = vand.u32 65535, %v823_v31  ;;  %v813_v47 = vcvt.s32.f32 %v811_v45 }
 0x2c1   :  { %vm719_vm7 = vcmp.gt.f32.partialorder %v711_v29, %v1543_v41  ;;  %vm727_vm2 = vcmp.eq.f32.partialorder %v711_v29, %v1543_v41  ;;  %vm726_vm8 = vcmp.eq.f32.partialorder %v711_v29, %v1532_v34  ;;  %vm718_vm10 = vcmp.gt.f32.partialorder %v711_v29, %v1532_v34 }
 0x2c2   :  { %vm741_vm9 = vmand %vm727_vm2, %vm729_vm5  ;;  %v827_v41 = vcvt.s32.f32 %v825_v14  ;;  %v826_v49 = vcvt.s32.f32 %v824_v46  ;;  %v919_v51 = vmul.f32 %v886_v60, %v1367_v52 }
 0x2c3   :  { %vm749_vm11 = vmor %vm719_vm7, %vm741_vm9  ;;  %789 = vadd.xlane.f32.xlu0 %v787_v32  ;;  %vm1042_vm9 = vcmask 1043459  }
 0x2c4   :  { %v757_v37 = vsel %vm749_vm11, 1, %v1275_v36  ;;  %vm740_vm12 = vmand %vm726_vm8, %vm728_vm4  ;;  %802 = vadd.xlane.f32.xlu1 %v800_v13  ;;  %vm1040_vm8 = vcmask 1042434   ;;  %vm1076_vm11 = vcmask 519168  }
 0x2c5   :  { %v849_v38 = vsel %vm43_vm0, %v757_v37, 0  ;;  %vm748_vm13 = vmor %vm718_vm10, %vm740_vm12 }
 0x2c6   :  { %v851_v39 = vshrl.u32 %v849_v38, 16  ;;  %v756_v40 = vsel %vm748_vm13, 1, %v1275_v36  ;;  %v850_v54 = vand.u32 65535, %v849_v38  ;;  %v920_v38 = vmul.f32 %v891_v63, %v1387_v15 }
 0x2c7   :  { %v836_v34 = vsel %vm43_vm0, %v756_v40, 0  ;;  %817 = vadd.xlane.f32.xlu0 %v814_v50  ;;  %vm1095_vm13 = vcmask 1043456  }
 0x2c8   :  { %v838_v7 = vshrl.u32 %v836_v34, 16  ;;  %830 = vadd.xlane.f32.xlu1 %v827_v41  ;;  %v853_v42 = vcvt.s32.f32 %v851_v39  ;;  %v837_v48 = vand.u32 65535, %v836_v34  ;;  %v852_v36 = vcvt.s32.f32 %v850_v54 }
 0x2ca   :  { %v840_v43 = vcvt.s32.f32 %v838_v7  ;;  %v839_v55 = vcvt.s32.f32 %v837_v48 }
 0x2cc   :  { %843 = vadd.xlane.f32.xlu0 %v840_v43  ;;  %856 = vadd.xlane.f32.xlu1 %v853_v42  ;;  %v921_v42 = vmul.f32 %v896_v59, %v1370_v57 }
 0x2d0   :  { %815 = vadd.xlane.f32.xlu0 %v813_v47  ;;  %828 = vadd.xlane.f32.xlu1 %v826_v49 }
 0x2d4   :  { %841 = vadd.xlane.f32.xlu0 %v839_v55  ;;  %854 = vadd.xlane.f32.xlu1 %v852_v36 }
 0x2e5   :  { %910 = vperm.xlu1 %1203, %v1242_v56  }
 0x2ea   :  { %915 = vperm.xlu0 %1202, %v1244_v58  }
 0x33d   :  { %v766_v5 = vpop.xlane.xlu1 %765 }
 0x33e   :  { %v768_v61 = vcvt.f32.s32 %v766_v5 }
 0x340   :  { %v779_v4 = vpop.xlane.xlu0 %778  ;;  %v769_v8 = vshll.u32 %v768_v61, 16 }
 0x341   :  { %v781_v44 = vcvt.f32.s32 %v779_v4 }
 0x343   :  { %v782_v21 = vshll.u32 %v781_v44, 16 }
 0x344   :  { %v792_v9 = vpop.xlane.xlu0 %791 }
 0x345   :  { %v805_v10 = vpop.xlane.xlu1 %804  ;;  %v794_v18 = vcvt.f32.s32 %v792_v9 }
 0x346   :  { %v807_v22 = vcvt.f32.s32 %v805_v10 }
 0x347   :  { %v795_v0 = vshll.u32 %v794_v18, 16 }
 0x348   :  { %v764_v12 = vpop.xlane.xlu0 %763  ;;  %v808_v13 = vshll.u32 %v807_v22, 16 }
 0x349   :  { %v767_v16 = vcvt.f32.s32 %v764_v12  ;;  %v777_v20 = vpop.xlane.xlu1 %776 }
 0x34a   :  { %v780_v23 = vcvt.f32.s32 %v777_v20 }
 0x34b   :  { %v770_v25 = vadd.s32 %v769_v8, %v767_v16 }
 0x34c   :  { %v790_v27 = vpop.xlane.xlu0 %789  ;;  %v783_v29 = vadd.s32 %v782_v21, %v780_v23  ;;  %v923_v21 = vmul.f32 %v1595_v2, %v1398_v24 }
 0x34d   :  { %vm862_vm0 = vcmp.lt.s32.totalorder %v770_v25, 8  ;;  %v793_v30 = vcvt.f32.s32 %v790_v27  ;;  %v803_v35 = vpop.xlane.xlu1 %802  ;;  %v922_v27 = vmul.f32 %v1597_v3, %v1419_v33 }
 0x34e   :  { %v942_v31 = vsel %vm862_vm0, %v918_v26, -1e+30  ;;  %v986_v32 = vsel %vm862_vm0, %v918_v26, 0.0  ;;  %vm863_vm4 = vcmp.lt.s32.totalorder %v783_v29, 8  ;;  %v806_v37 = vcvt.f32.s32 %v803_v35 }
 0x34f   :  { %v950_v14 = vsel %vm536_vm1, %v942_v31, -inf  ;;  %v943_v50 = vsel %vm863_vm4, %v919_v51, -1e+30  ;;  %v987_v39 = vsel %vm863_vm4, %v919_v51, 0.0  ;;  %v796_v6 = vadd.s32 %v795_v0, %v793_v30 }
 0x350   :  { %v818_v40 = vpop.xlane.xlu0 %817  ;;  %v951_v34 = vsel %vm536_vm1, %v943_v50, -inf  ;;  %v995_v41 = vsel %vm536_vm1, %v987_v39, 0.0  ;;  %v994_v52 = vsel %vm536_vm1, %v986_v32, 0.0  ;;  %v809_v7 = vadd.s32 %v808_v13, %v806_v37 }
 0x351   :  { %v952_v43 = vmax.f32 %v950_v14, %v951_v34  ;;  %vm864_vm5 = vcmp.lt.s32.totalorder %v796_v6, 8  ;;  %v831_v45 = vpop.xlane.xlu1 %830  ;;  %v820_v15 = vcvt.f32.s32 %v818_v40  ;;  %v996_v49 = vadd.f32 %v995_v41, %v994_v52 }
 0x352   :  { %vm865_vm14 = vcmp.lt.s32.totalorder %v809_v7, 8  ;;  %v944_v46 = vsel %vm864_vm5, %v920_v38, -1e+30  ;;  %v988_v47 = vsel %vm864_vm5, %v920_v38, 0.0  ;;  %v833_v5 = vcvt.f32.s32 %v831_v45 }
 0x353   :  { %v953_v48 = vrot.slane %v952_v43, 4  ;;  %v945_v54 = vsel %vm865_vm14, %v921_v42, -1e+30  ;;  %v989_v55 = vsel %vm865_vm14, %v921_v42, 0.0  ;;  %v959_v60 = vsel %vm536_vm1, %v944_v46, -inf }
 0x354   :  { %v960_v56 = vsel %vm536_vm1, %v945_v54, -inf  ;;  %v1004_v58 = vsel %vm536_vm1, %v989_v55, 0.0  ;;  %v1003_v57 = vsel %vm536_vm1, %v988_v47, 0.0  ;;  %v997_v61 = vrot.slane %v996_v49, 4 }
 0x355   :  { %v844_v36 = vpop.xlane.xlu0 %843  ;;  %v954_v59 = vmax.f32 %v952_v43, %v953_v48  ;;  %v961_v62 = vmax.f32 %v959_v60, %v960_v56  ;;  %v1005_v63 = vadd.f32 %v1004_v58, %v1003_v57  ;;  %v857_v4 = vpop.xlane.xlu1 %856  ;;  %v821_v8 = vshll.u32 %v820_v15, 16 }
 0x356   :  { %v859_v16 = vcvt.f32.s32 %v857_v4  ;;  %v846_v18 = vcvt.f32.s32 %v844_v36  ;;  %v834_v29 = vshll.u32 %v833_v5, 16  ;;  %v998_v31 = vadd.f32 %v997_v61, %v996_v49 }
 0x357   :  { %v955_v9 = vrot.slane %v954_v59, 2  ;;  %v962_v10 = vrot.slane %v961_v62, 4  ;;  %v1006_v44 = vrot.slane %v1005_v63, 4 }
 0x358   :  { %v860_v13 = vshll.u32 %v859_v16, 16  ;;  %v847_v14 = vshll.u32 %v846_v18, 16  ;;  %v999_v60 = vrot.slane %v998_v31, 2 }
 0x359   :  { %v816_v12 = vpop.xlane.xlu0 %815  ;;  %v956_v22 = vmax.f32 %v954_v59, %v955_v9  ;;  %v963_v23 = vmax.f32 %v961_v62, %v962_v10  ;;  %v1007_v25 = vadd.f32 %v1006_v44, %v1005_v63  ;;  %v829_v26 = vpop.xlane.xlu1 %828 }
 0x35a   :  { %v819_v20 = vcvt.f32.s32 %v816_v12  ;;  %v832_v30 = vcvt.f32.s32 %v829_v26  ;;  %v1000_v18 = vadd.f32 %v999_v60, %v998_v31 }
 0x35b   :  { %v957_v0 = vrot.slane %v956_v22, 1  ;;  %v964_v32 = vrot.slane %v963_v23, 2  ;;  %v1008_v2 = vrot.slane %v1007_v25, 2 }
 0x35c   :  { %v822_v51 = vadd.s32 %v821_v8, %v819_v20  ;;  %v835_v37 = vadd.s32 %v834_v29, %v832_v30  ;;  %v1001_v30 = vrot.slane %v1000_v18, 1 }
 0x35d   :  { %v842_v35 = vpop.xlane.xlu0 %841  ;;  %v965_v24 = vmax.f32 %v963_v23, %v964_v32  ;;  %v855_v50 = vpop.xlane.xlu1 %854  ;;  %v958_v40 = vmax.f32 %v956_v22, %v957_v0  ;;  %v1009_v63 = vadd.f32 %v1008_v2, %v1007_v25 }
 0x35e   :  { %vm866_vm3 = vcmp.lt.s32.totalorder %v822_v51, 8  ;;  %v845_v39 = vcvt.f32.s32 %v842_v35  ;;  %vm867_vm6 = vcmp.lt.s32.totalorder %v835_v37, 8  ;;  %v858_v6 = vcvt.f32.s32 %v855_v50 }
 0x35f   :  { %v946_v38 = vsel %vm866_vm3, %v922_v27, -1e+30  ;;  %v990_v3 = vsel %vm866_vm3, %v922_v27, 0.0  ;;  %v966_v34 = vrot.slane %v965_v24, 1  ;;  %v947_v41 = vsel %vm867_vm6, %v923_v21, -1e+30 }
 0x360   :  { %v968_v33 = vsel %vm536_vm1, %v946_v38, -inf  ;;  %v991_v52 = vsel %vm867_vm6, %v923_v21, 0.0  ;;  %v969_v7 = vsel %vm536_vm1, %v947_v41, -inf  ;;  %v1012_v43 = vsel %vm536_vm1, %v990_v3, 0.0 }
 0x361   :  { %v1013_v42 = vsel %vm536_vm1, %v991_v52, 0.0  ;;  %v861_v45 = vadd.s32 %v860_v13, %v858_v6  ;;  %v967_v46 = vmax.f32 %v965_v24, %v966_v34  ;;  %v970_v47 = vmax.f32 %v968_v33, %v969_v7  ;;  %v911_v49 = vpop.permute.xlu1 %910 }
 0x362   :  { %v1014_v15 = vadd.f32 %v1013_v42, %v1012_v43  ;;  %v848_v48 = vadd.s32 %v847_v14, %v845_v39  ;;  %v924_v54 = vmul.f32 %v911_v49, %v1426_v1  ;;  %v1010_v23 = vrot.slane %v1009_v63, 1 }
 0x363   :  { %v971_v55 = vrot.slane %v970_v47, 4  ;;  %v1039_v58 = vsel %vm1038_vm15, %v967_v46, %v958_v40  ;;  %vm869_vm2 = vcmp.lt.s32.totalorder %v861_v45, 8  ;;  %v1002_v38 = vadd.f32 %v1001_v30, %v1000_v18  ;;  %v1148_v18 = vld [vmem:[%s1652_s2 + $0x6] ss:$0 sm:$0xff] }
 0x364   :  { %v1015_v36 = vrot.slane %v1014_v15, 4  ;;  %vm868_vm7 = vcmp.lt.s32.totalorder %v848_v48, 8  ;;  %v1011_v14 = vadd.f32 %v1010_v23, %v1009_v63  ;;  %v1276_v41 = vmov 65  }
 0x365   :  { %v916_v56 = vpop.permute.xlu0 %915  ;;  %v948_v57 = vsel %vm868_vm7, %v924_v54, -1e+30  ;;  %v992_v59 = vsel %vm868_vm7, %v924_v54, 0.0  ;;  %v972_v4 = vmax.f32 %v970_v47, %v971_v55  ;;  %v1030_v40 = vmul.f32 0.125, %v1002_v38  ;;  %1204 = vset.pattern.permute.xlu0 %v1276_v41 }
 0x366   :  { %v925_v62 = vmul.f32 %v916_v56, %v1407_v28  ;;  %v1016_v5 = vadd.f32 %v1015_v36, %v1014_v15  ;;  %v977_v9 = vsel %vm536_vm1, %v948_v57, -inf  ;;  %v1021_v61 = vsel %vm536_vm1, %v992_v59, 0.0 }
 0x367   :  { %v973_v44 = vrot.slane %v972_v4, 2  ;;  %v1031_v39 = vmul.f32 0.125, %v1011_v14  ;;  %v1056_v46 = vmul.u32 64, %v1458_v11  ;;  %v1059_v15 = vstv %s1650_s0 }
 0x368   :  { %v949_v1 = vsel %vm869_vm2, %v925_v62, -1e+30  ;;  %v993_v10 = vsel %vm869_vm2, %v925_v62, 0.0  ;;  %v1017_v12 = vrot.slane %v1016_v5, 2 }
 0x369   :  { %v978_v8 = vsel %vm536_vm1, %v949_v1, -inf  ;;  %v1022_v16 = vsel %vm536_vm1, %v993_v10, 0.0  ;;  %v974_v28 = vmax.f32 %v972_v4, %v973_v44  ;;  %v1049_v7 = vsel %vm1038_vm15, %v1031_v39, %v1030_v40 }
 0x36a   :  { %v979_v20 = vmax.f32 %v977_v9, %v978_v8  ;;  %v1023_v21 = vadd.f32 %v1022_v16, %v1021_v61  ;;  %v1018_v22 = vadd.f32 %v1017_v12, %v1016_v5  ;;  %v1057_v47 = vadd.s32 %v1056_v46, %v1486_v53  ;;  %v1147_v9 = vld [vmem:[%s1652_s2 + $0x5] ss:$0 sm:$0xff]  ;;  %v1149_v16 = vld [vmem:[%s1652_s2 + $0x7] ss:$0 sm:$0xff] }
 0x36b   :  { %v975_v27 = vrot.slane %v974_v28, 1  ;;  %v1088_v8 = vcvt.s32.f32 %v1458_v11 }
 0x36c   :  { %v980_v25 = vrot.slane %v979_v20, 4  ;;  %v1024_v26 = vrot.slane %v1023_v21, 4  ;;  %v1019_v29 = vrot.slane %v1018_v22, 1  ;;  %v1060_v48 = vadd.s32 %v1059_v15, %v1057_v47 }
 0x36d   :  { %v976_v32 = vmax.f32 %v974_v28, %v975_v27  ;;  %vm1093_vm12 = vcmp.eq.f32.partialorder %v1088_v8, %v1148_v18 }
 0x36e   :  { %v981_v51 = vmax.f32 %v979_v20, %v980_v25  ;;  %v1025_v0 = vadd.f32 %v1024_v26, %v1023_v21  ;;  %v1020_v37 = vadd.f32 %v1019_v29, %v1018_v22  ;;  %v1061_v49 = vshrl.u32 %v1060_v48, 16 }
 0x36f   :  { %v1041_v31 = vsel %vm1040_vm8, %v976_v32, %v1039_v58 }
 0x370   :  { %v982_v35 = vrot.slane %v981_v51, 2  ;;  %v1026_v13 = vrot.slane %v1025_v0, 2  ;;  %v1032_v3 = vmul.f32 0.125, %v1020_v37  ;;  %v1062_v54 = vxor.u32 %v1061_v49, %v1060_v48 }
 0x372   :  { %v983_v24 = vmax.f32 %v981_v51, %v982_v35  ;;  %v1027_v2 = vadd.f32 %v1026_v13, %v1025_v0  ;;  %v1050_v43 = vsel %vm1040_vm8, %v1032_v3, %v1049_v7  ;;  %v1063_v55 = vmul.u32 2146121005, %v1062_v54 }
 0x374   :  { %v1028_v50 = vrot.slane %v1027_v2, 1  ;;  %v984_v33 = vrot.slane %v983_v24, 1  ;;  %v1064_v36 = vshrl.u32 %v1063_v55, 15 }
 0x376   :  { %v1029_v6 = vadd.f32 %v1028_v50, %v1027_v2  ;;  %v985_v34 = vmax.f32 %v983_v24, %v984_v33  ;;  %v1065_v56 = vxor.u32 %v1064_v36, %v1063_v55 }
 0x378   :  { %v1033_v52 = vmul.f32 0.125, %v1029_v6  ;;  %v1043_v42 = vsel %vm1042_vm9, %v985_v34, %v1041_v31  ;;  %v1066_v58 = vmul.u32 2221713035, %v1065_v56 }
 0x37a   :  { %v1051_v45 = vsel %vm1042_vm9, %v1033_v52, %v1050_v43  ;;  %v1067_v60 = vshrl.u32 %v1066_v58, 16 }
 0x37b   :  { %1052 = vrot.lane.b32.xlu1 %v1051_v45, %s1277_s28 }
 0x37c   :  { %v1068_v57 = vxor.u32 %v1067_v60, %v1066_v58 }
 0x37e   :  { %v1069_v59 = vand.u32 8388607, %v1068_v57 }
 0x380   :  { %v1070_v62 = vcvt.s32.f32 %v1069_v59 }
 0x382   :  { %v1071_v63 = vmul.f32 1.1920929e-07, %v1070_v62 }
 0x384   :  { %vm1072_vm10 = vcmp.ge.f32.partialorder %v1071_v63, 0.2 }
 0x3ed   :  { %v1053_v4 = vpop.permute.xlu1 %1052 }
 0x3ee   :  { %v1055_v5 = vsel %vm536_vm1, %v1043_v42, %v1053_v4  ;;  %vm1107_vm1 = vcmp.eq.f32.partialorder %v1088_v8, %v1149_v16 }
 0x3ef   :  { %v1073_v53 = vmul.f32 1.25, %v1055_v5 }
 0x3f1   :  { %v1074_v61 = vsel %vm1072_vm10, %v1073_v53, 0.0 }
 0x3f2   :  { %v1084_v1 = vmul.f32 %v1147_v9, %v1074_v61  ;;  %v1075_v10 = vmul.f32 %v1074_v61, %v1467_v19 }
 0x3f4   :  { %v1085_v44 = vsel %vm1076_vm11, %v1084_v1, 0.0  ;;  %v1077_v12 = vsel %vm1076_vm11, %v1075_v10, 0.0 }
 0x3f5   :  { %1086 = vadd.xlane.f32.xlu1 %v1085_v44  ;;  %1078 = vadd.xlane.f32.xlu0 %v1077_v12 }
 0x40b   :  { %1119 = vperm.xlu0 %1204, %v1464_v17  }
 0x47e   :  { %v1087_v19 = vpop.xlane.xlu1 %1086  ;;  %v1079_v20 = vpop.xlane.xlu0 %1078 }
 0x47f   :  { %v1108_v21 = vsel %vm1107_vm1, %v1087_v19, 0.0  ;;  %v1094_v28 = vsel %vm1093_vm12, %v1079_v20, 0.0 }
 0x480   :  { %v1109_v22 = vsel %vm1095_vm13, %v1108_v21, 0.0  ;;  %v1096_v23 = vsel %vm1095_vm13, %v1094_v28, 0.0 }
 0x481   :  { %v1110_v17 = vrot.slane %v1109_v22, 4  ;;  %v1097_v25 = vrot.slane %v1096_v23, 4 }
 0x483   :  { %v1111_v11 = vadd.f32 %v1110_v17, %v1109_v22  ;;  %v1098_v26 = vadd.f32 %v1097_v25, %v1096_v23 }
 0x485   :  { %v1112_v27 = vrot.slane %v1111_v11, 2  ;;  %v1099_v29 = vrot.slane %v1098_v26, 2 }
 0x486   :  { %v1120_v14 = vpop.permute.xlu0 %1119 }
 0x487   :  { %v1113_v30 = vadd.f32 %v1112_v27, %v1111_v11  ;;  %v1100_v51 = vadd.f32 %v1099_v29, %v1098_v26 }
 0x489   :  { %v1101_v0 = vrot.slane %v1100_v51, 1  ;;  %v1114_v32 = vrot.slane %v1113_v30, 1 }
 0x48b   :  { %v1102_v35 = vadd.f32 %v1101_v0, %v1100_v51  ;;  %v1115_v13 = vadd.f32 %v1114_v32, %v1113_v30 }
 0x48d   :  { %v1116_v37 = vadd.f32 %v1115_v13, %v1102_v35 }
 0x48f   :  { %v1122_v31 = vadd.f32 %v1120_v14, %v1116_v37 }
 0x491   :  { %v1150_v24 = vmul.f32 -1.442695, %v1122_v31 }
 0x493   :  { %1245 = vpow2.f32 %v1150_v24 }
 0x4a0   :  { %v1246_v2 = vpop.eup %1245 }
 0x4a1   :  { %v1126_v38 = vadd.f32 1.0, %v1246_v2 }
 0x4a3   :  { %1247 = vrcp.f32 %v1126_v38 }
 0x4b0   :  { %v1248_v50 = vpop.eup %1247 }
 0x4b1   :  { %1129 = vst [vmem:[%s1653_s3] sm:$0x1] %v1248_v50 }
 0x4b2   :  { %1134 = vsyncpa [#allocation5], 1 }

</bundles_post_ra>
